<compile_context>
chip_gen: v7x
topology: tpu7x:2x2x1
jax: 0.10.0
libtpu: 0.0.40
codegen_flags: <defaults>
</compile_context>

<pallas_src>
import jax
import jax.numpy as jnp
from jax.experimental import pallas as pl
from jax.experimental.pallas import tpu as pltpu


# --------------------------------------------------------------------------
# Kernel
# --------------------------------------------------------------------------
def _make_norm_kernel(eps: float, d_model: int):
    inv_d = 1.0 / float(d_model)
    # torch.std default is unbiased (ddof=1).  Note: for d_model == 1 torch
    # yields NaN; the max() guard below yields a zero-variance output instead.
    inv_dm1 = 1.0 / float(max(d_model - 1, 1))

    def norm_kernel(params_ref, x_ref, o_ref):
        # params_ref: (2, D) f32 [alpha; bias].  x_ref: (bm, D) tile in VMEM.
        x = x_ref[...].astype(jnp.float32)
        mean = jnp.sum(x, axis=-1, keepdims=True) * jnp.float32(inv_d)
        xc = x - mean
        var = jnp.sum(xc * xc, axis=-1, keepdims=True) * jnp.float32(inv_dm1)
        std = jnp.sqrt(var)
        # Per-row reciprocal on a (bm, 1) column -> broadcast multiply.
        inv = 1.0 / (std + jnp.float32(eps))
        alpha = params_ref[0:1, :]
        bias = params_ref[1:2, :]
        y = (xc * inv) * alpha + bias
        o_ref[...] = y.astype(o_ref.dtype)

    return norm_kernel


# --------------------------------------------------------------------------
# Tile sizing
# --------------------------------------------------------------------------
def _round_up(x: int, m: int) -> int:
    return ((x + m - 1) // m) * m


def _choose_block_rows(n_rows: int, d_model: int, itemsize: int,
                       vmem_budget_bytes: int = 32 * 1024 * 1024) -> int:
    """Largest sublane-aligned row tile whose double-buffered in+out footprint
    plus f32 intermediates stays within a generation-safe VMEM budget, while
    guaranteeing the row grid has at least 2 steps (v7x megacore split)."""
    # sublane packing: f32 -> 8 rows / vreg, bf16 -> 16, int8/fp8 -> 32
    align = {4: 8, 2: 16, 1: 32}.get(itemsize, 8)
    # 2x input bufs + 2x output bufs (native dtype) + ~3 f32 intermediates
    # (x_f32 / xc / y) — conservative, matters for bf16/int8 on v5e.
    per_row = (4 * itemsize + 12) * d_model
    br = vmem_budget_bytes // max(per_row, 1)
    # Ensure >= 2 grid steps when the whole input would fit in one tile, so
    # dimension_semantics=("parallel",) can split rows across v7x's 2 TCs.
    half_rows = _round_up(-(-n_rows // 2), align)
    br = min(br, half_rows)
    br = (br // align) * align
    return max(br, align)


# --------------------------------------------------------------------------
# Wrapper
# --------------------------------------------------------------------------
def norm_pallas(x, alpha, bias, eps: float = 1e-6, block_rows: int | None = None):
    """x: (..., D).  alpha, bias: (D,) float parameters.  Returns x's shape/dtype."""
    orig_shape = x.shape
    D = orig_shape[-1]
    x2 = x.reshape(-1, D)
    N = x2.shape[0]
    itemsize = jnp.dtype(x.dtype).itemsize

    if block_rows is None:
        block_rows = _choose_block_rows(N, D, itemsize)

    # alpha/bias stay f32 end-to-end (no quantization through x.dtype);
    # stacked into one (2, D) broadcast input fetched once.
    params = jnp.stack(
        [alpha.reshape(D).astype(jnp.float32), bias.reshape(D).astype(jnp.float32)],
        axis=0,
    )

    kernel = _make_norm_kernel(eps, D)
    grid = (pl.cdiv(N, block_rows),)  # ragged final block: masked stores, no pad/slice

    cost = pl.CostEstimate(
        flops=8 * N * D,
        transcendentals=2 * N,
        bytes_accessed=2 * N * D * itemsize + 2 * D * 4,
    )

    out = pl.pallas_call(
        kernel,
        out_shape=jax.ShapeDtypeStruct((N, D), x.dtype),
        grid_spec=pltpu.PrefetchScalarGridSpec(
            num_scalar_prefetch=0,
            grid=grid,
            in_specs=[
                pl.BlockSpec((2, D), lambda i: (0, 0)),            # alpha/bias (broadcast)
                pl.BlockSpec((block_rows, D), lambda i: (i, 0)),   # x tile
            ],
            out_specs=pl.BlockSpec((block_rows, D), lambda i: (i, 0)),
        ),
        compiler_params=pltpu.CompilerParams(
            # Let the runtime shard the row loop across TensorCores on
            # multi-TC parts (v7x); harmless on single-TC v5e/v6e.
            dimension_semantics=("parallel",),
            # Above the 16/32 MiB default scoped limits, below v7x's 64 MiB
            # physical VMEM.
            vmem_limit_bytes=48 * 1024 * 1024,
        ),
        cost_estimate=cost,
    )(params, x2)

    return out.reshape(orig_shape)


# --------------------------------------------------------------------------
# Pure-JAX reference matching the PyTorch forward exactly
# --------------------------------------------------------------------------
def norm_reference(x, alpha, bias, eps: float = 1e-6):
    xf = x.astype(jnp.float32)
    mean = jnp.mean(xf, axis=-1, keepdims=True)
    std = jnp.std(xf, axis=-1, keepdims=True, ddof=1)  # unbiased, as in torch
    return (alpha * (xf - mean) / (std + eps) + bias).astype(x.dtype)


if __name__ == "__main__":
    key = jax.random.PRNGKey(0)

    # Case 1: the module's typical (batch, seq, d_model) input.
    batch, seq, d_model = 2, 8, 128
    x = jax.random.normal(key, (batch, seq, d_model), dtype=jnp.float32)
    alpha = jnp.ones((d_model,), dtype=jnp.float32)   # nn.Parameter(torch.ones)
    bias = jnp.zeros((d_model,), dtype=jnp.float32)   # nn.Parameter(torch.zeros)

    out = jax.block_until_ready(norm_pallas(x, alpha, bias, eps=1e-6))
    ref = norm_reference(x, alpha, bias, eps=1e-6)
    assert out.shape == x.shape
    assert jnp.allclose(out, ref, atol=1e-5, rtol=1e-5), "mismatch vs reference (case 1)"

    # Case 2: row count not divisible by the tile size (exercises the ragged
    # final block / masked-store path) plus non-trivial alpha/bias.
    key2 = jax.random.PRNGKey(1)
    x2 = jax.random.normal(key2, (3, 5, d_model), dtype=jnp.float32)  # 15 rows
    k_a, k_b = jax.random.split(key2)
    alpha2 = 1.0 + 0.1 * jax.random.normal(k_a, (d_model,), dtype=jnp.float32)
    bias2 = 0.1 * jax.random.normal(k_b, (d_model,), dtype=jnp.float32)

    out2 = jax.block_until_ready(norm_pallas(x2, alpha2, bias2, eps=1e-6))
    ref2 = norm_reference(x2, alpha2, bias2, eps=1e-6)
    assert out2.shape == x2.shape
    assert jnp.allclose(out2, ref2, atol=1e-5, rtol=1e-5), "mismatch vs reference (case 2)"

    # Case 3: bf16 activations with f32 parameters (params stay f32 in-kernel).
    x3 = jax.random.normal(jax.random.PRNGKey(2), (2, 8, d_model), dtype=jnp.bfloat16)
    out3 = jax.block_until_ready(norm_pallas(x3, alpha2, bias2, eps=1e-6))
    ref3 = norm_reference(x3, alpha2, bias2, eps=1e-6)
    assert out3.shape == x3.shape
    assert jnp.allclose(out3.astype(jnp.float32), ref3.astype(jnp.float32),
                        atol=2e-2, rtol=2e-2), "mismatch vs reference (case 3)"

    print("KERNEL_OK")
</pallas_src>

<mosaic_0001>
module attributes {stable_mosaic.version = 11 : i64} {
  func.func @norm_kernel(%arg0: i32, %arg1: memref<2x128xf32, #tpu.memory_space<vmem>>, %arg2: memref<8x128xf32, #tpu.memory_space<vmem>>, %arg3: memref<8x128xf32, #tpu.memory_space<vmem>>) attributes {dimension_semantics = [#tpu.dimension_semantics<parallel>], iteration_bounds = array<i64: 2>, scalar_prefetch = 0 : i64, scratch_operands = 0 : i64, tpu.core_type = #tpu.core_type<tc>, window_params = [{pipeline_mode = #tpu.pipeline_mode<synchronous>, transform_indices = @transform_0, window_bounds = array<i64: 2, 128>}, {transform_indices = @transform_1, window_bounds = array<i64: 8, 128>}, {transform_indices = @transform_2, window_bounds = array<i64: 8, 128>}]} {
    %c0 = arith.constant 0 : index
    %c0_0 = arith.constant 0 : index
    %0 = vector.load %arg2[%c0, %c0_0] : memref<8x128xf32, #tpu.memory_space<vmem>>, vector<8x128xf32>
    %cst = arith.constant dense<0.000000e+00> : vector<8xf32>
    %1 = vector.multi_reduction <add>, %0, %cst [1] : vector<8x128xf32> to vector<8xf32>
    %2 = vector.shape_cast %1 : vector<8xf32> to vector<8x1xf32>
    %cst_1 = arith.constant 7.812500e-03 : f32
    %3 = vector.broadcast %cst_1 : f32 to vector<8x1xf32>
    %4 = arith.mulf %2, %3 : vector<8x1xf32>
    %5 = vector.broadcast %4 : vector<8x1xf32> to vector<8x128xf32>
    %6 = arith.subf %0, %5 : vector<8x128xf32>
    %7 = arith.mulf %6, %6 : vector<8x128xf32>
    %cst_2 = arith.constant dense<0.000000e+00> : vector<8xf32>
    %8 = vector.multi_reduction <add>, %7, %cst_2 [1] : vector<8x128xf32> to vector<8xf32>
    %9 = vector.shape_cast %8 : vector<8xf32> to vector<8x1xf32>
    %cst_3 = arith.constant 0.00787401571 : f32
    %10 = vector.broadcast %cst_3 : f32 to vector<8x1xf32>
    %11 = arith.mulf %9, %10 : vector<8x1xf32>
    %12 = math.sqrt %11 : vector<8x1xf32>
    %cst_4 = arith.constant 9.99999997E-7 : f32
    %13 = vector.broadcast %cst_4 : f32 to vector<8x1xf32>
    %14 = arith.addf %12, %13 : vector<8x1xf32>
    %cst_5 = arith.constant 1.000000e+00 : f32
    %15 = vector.broadcast %cst_5 : f32 to vector<8x1xf32>
    %16 = arith.divf %15, %14 : vector<8x1xf32>
    %c0_6 = arith.constant 0 : index
    %c0_7 = arith.constant 0 : index
    %17 = vector.load %arg1[%c0_6, %c0_7] : memref<2x128xf32, #tpu.memory_space<vmem>>, vector<1x128xf32>
    %c1 = arith.constant 1 : index
    %c0_8 = arith.constant 0 : index
    %18 = vector.load %arg1[%c1, %c0_8] : memref<2x128xf32, #tpu.memory_space<vmem>>, vector<1x128xf32>
    %19 = vector.broadcast %16 : vector<8x1xf32> to vector<8x128xf32>
    %20 = arith.mulf %6, %19 : vector<8x128xf32>
    %21 = vector.broadcast %17 : vector<1x128xf32> to vector<8x128xf32>
    %22 = arith.mulf %20, %21 : vector<8x128xf32>
    %23 = vector.broadcast %18 : vector<1x128xf32> to vector<8x128xf32>
    %24 = arith.addf %22, %23 : vector<8x128xf32>
    %c0_9 = arith.constant 0 : index
    %c0_10 = arith.constant 0 : index
    %25 = vector.load %arg3[%c0_9, %c0_10] : memref<8x128xf32, #tpu.memory_space<vmem>>, vector<8x128xf32>
    tpu.vector_store %arg3[%c0_9, %c0_10], %24 {strides = array<i32>} : memref<8x128xf32, #tpu.memory_space<vmem>>, vector<8x128xf32>,
    return
  }
  func.func @transform_0(%arg0: i32) -> (i32, i32) {
    %c0_i32 = arith.constant 0 : i32
    %c0_i32_0 = arith.constant 0 : i32
    %c0_i32_1 = arith.constant 0 : i32
    return %c0_i32, %c0_i32_0 : i32, i32
  }
  func.func @transform_1(%arg0: i32) -> (i32, i32) {
    %c0_i32 = arith.constant 0 : i32
    %c0_i32_0 = arith.constant 0 : i32
    return %arg0, %c0_i32 : i32, i32
  }
  func.func @transform_2(%arg0: i32) -> (i32, i32) {
    %c0_i32 = arith.constant 0 : i32
    %c0_i32_0 = arith.constant 0 : i32
    return %arg0, %c0_i32 : i32, i32
  }
}

</mosaic_0001>

<bundles_post_ra>
// kernel: tpu_custom_call.1
= control target key start
LH: loop header
LB: loop body
LE: loop exit
PB: predicated region body
PF: predicated region fallthrough
CT: control target
= control target key end

     0   :  { %7 = vsyncpa [#allocation3], 0  ;;  %s727_s0 = inlined_call_operand.hbm [shape: f32[2,128], index: 0, kind: input, shape index: {}]   ;;  %s728_s1 = inlined_call_operand.hbm [shape: f32[16,128], index: 1, kind: input, shape index: {}]   ;;  %s729_s2 = inlined_call_operand.hbm [shape: f32[16,128], index: 2, kind: output, shape index: {}]  }
   0x1   :  { %8 = vsyncpa [#allocation6], 0 }
   0x2   :  { %10 = vsyncpa [#allocation6 + $0x1], 0 }
   0x3   :  { %11 = vsyncpa [#allocation4], 0 }
   0x4   :  { %13 = vsyncpa [#allocation4 + $0x1], 0  ;;  %s526_s9 = smov 0   ;;  %s528_s10 = smov 0  }
   0x5   :  { %s530_s11 = smov 0   ;;  %s532_s12 = smov 0  }
   0x6 LB: > { %s547_s13 = sadd.s32 4294967295, %s506_s12   ;;  %s301_s14 = sadd.s32 4294967294, %s506_s12   ;;  %s506_s12 = sphi %s532_s12, %s753_s12   ;;  %s502_s11 = sphi %s530_s11, %s752_s11   ;;  %s498_s10 = sphi %s528_s10, %s751_s10   ;;  %s494_s9 = sphi %s526_s9, %s750_s9  }
   0x7   : > { %p60_p0 = scmp.ne.s32.totalorder %s498_s10, %s494_s9  ;;  %p730_p1 = scmp.eq.s32.totalorder %s547_s13, 0 }
   0x8   : > { %p90_p3 = scmp.eq.s32.totalorder %s301_s14, 1  ;;  %p302_p5 = scmp.ge.s32.totalorder %s506_s12, 1 }
   0x9   : > { %p556_p4 = por %p730_p1, %p60_p0  ;;  %p97_p7 = scmp.lt.s32.totalorder %s506_s12, 3 }
   0xa   : > { %p561_p6 = por %p90_p3, %p60_p0  ;;  %s508_s18 = smov [#allocation2]  }
   0xb   : > { %s733_s15 = scalar_select %p556_p4, 1, 0 }
   0xc   : > { %s734_s16 = scalar_select %p561_p6, 1, 0 }
   0xd   : > { %p566_p8 = pnand %p302_p5, %p97_p7  ;;  %s110_s19 = sshll.u32 %s508_s18, 4  ;;  %s111_s19 = int_to_ptr.vmem [resolvable:$true] %s110_s19 }
   0xe   : > { %s574_s20 = sadd.s32 1, %s506_s12   ;;  %s47_s24 = sadd.s32 1, %s502_s11 }
   0xf   : > { %s735_s17 = scalar_select %p566_p8, 1, 0 }
  0x10   : > { %p325_p10 = pneg %p566_p8  ;;  %s44_s22 = ssub.s32 %s506_s12, %s574_s20 }
  0x11   : > { %p584_p12 = scmp.eq.s32.totalorder %s44_s22, 0  ;;  %s378_s27 = scalar_lea.hbm %s727_s0, 32 }
  0x12   : > { %p578_p11 = pnand %p325_p10, %p730_p1  ;;  %p379_p0 = scmp.ne.s32.totalorder %s727_s0, %s378_s27 }
  0x13   : > { %s737_s23 = scalar_select %p584_p12, 1, 0 }
  0x14   : > { %p380_p3 = pneg %p578_p11  ;;  %p385_p10 = scmp.lt.u32.totalorder %s378_s27, %s727_s0 }
  0x16   : > { %p381_p5 = pnand %p380_p3, %p379_p0 }
  0x18   : > { %p382_p7 = pneg %p381_p5 }
  0x1a   : > { %p387_p9 = pnand %p385_p10, %p382_p7 }
  0x1c   : > { %390 = shalt.err (!%p387_p9)
}
  0x1d   : > { %s391_s4 = scalar_lea.vmem %s111_s19, 32  ;;  %p399_p6 = scmp.lt.s32.totalorder %s111_s19, %s111_s19 }
  0x1e   : > { %p392_p1 = scmp.ne.s32.totalorder %s111_s19, %s391_s4  ;;  %p400_p4 = scmp.lt.s32.totalorder %s391_s4, %s391_s4 }
  0x20   : > { %p394_p2 = pnand %p392_p1, %p380_p3  ;;  %p401_p8 = por %p400_p4, %p399_p6 }
  0x22   : > { %p395_p13 = pneg %p394_p2 }
  0x24   : > { %p402_p12 = pnand %p401_p8, %p395_p13 }
  0x26   : > { %405 = shalt.err (!%p402_p12)
}
  0x27   : > { %328 = dma.hbm_to_vmem [thread:$0]  (!%p578_p11), %s727_s0, 32, %s111_s19, [#allocation3]  }
  0x28   : > { %p738_p1 = scmp.ne.s32.totalorder %s737_s23, 0  ;;  %p55_p2 = scmp.eq.s32.totalorder %s506_s12, 0 }
  0x29   : > { %p739_p4 = scmp.ne.s32.totalorder %s502_s11, %s498_s10  ;;  %p740_p6 = scmp.eq.s32.totalorder %s547_s13, 1 }
  0x2a   : > { %s610_s7 = scalar_select %p738_p1, %s502_s11, %s47_s24  }
  0x2b   : > { %p618_p8 = por %p740_p6, %p739_p4  ;;  %p338_p9 = scmp.lt.s32.totalorder %s506_s12, 2 }
  0x2c   : > { %s121_s14 = sand.u32 1, %s502_s11   ;;  %p742_p12 = pmov %p739_p4 }
  0x2d   : > { %s305_s18 = sshll.u32 %s121_s14, 3  ;;  %s306_s21 = sshll.u32 %s506_s12, 7 }
  0x2e   : > { %p56_p13 = por %p55_p2, %p742_p12  ;;  %s631_s19 = scalar_lea.hbm %s728_s1, %s306_s21 }
  0x2f   : > { %s125_s23 = scalar_lea.vmem [#allocation5], %s305_s18  ;;  %s122_s27 = scalar_lea.sflag [#allocation6], %s121_s14 }
  0x30   : > { %s132_s24 = sshll.u32 %s125_s23, 4  ;;  %p633_p11 = pnand %p338_p9, %p56_p13  ;;  %s637_s24 = int_to_ptr.vmem [resolvable:$true] %s132_s24 }
  0x31   : > { %s406_s28 = scalar_lea.hbm %s631_s19, 128  ;;  %s411_s3 = scalar_lea.hbm %s728_s1, 256 }
  0x32   : > { %p407_p0 = scmp.ne.s32.totalorder %s631_s19, %s406_s28  ;;  %p408_p3 = pneg %p633_p11 }
  0x33   : > { %p412_p10 = scmp.lt.u32.totalorder %s631_s19, %s728_s1  ;;  %p413_p1 = scmp.lt.u32.totalorder %s411_s3, %s406_s28 }
  0x34   : > { %p409_p5 = pnand %p408_p3, %p407_p0  ;;  %p415_p4 = scmp.lt.u32.totalorder %s406_s28, %s631_s19 }
  0x35   : > { %p414_p2 = por %p413_p1, %p412_p10 }
  0x36   : > { %p410_p7 = pneg %p409_p5 }
  0x37   : > { %p416_p6 = por %p415_p4, %p414_p2 }
  0x39   : > { %p417_p9 = pnand %p416_p6, %p410_p7 }
  0x3b   : > { %420 = shalt.err (!%p417_p9)
}
  0x3c   : > { %s421_s6 = scalar_lea.vmem %s637_s24, 128  ;;  %s509_s14 = smov [#allocation5]  }
  0x3d   : > { %p422_p12 = scmp.ne.s32.totalorder %s637_s24, %s421_s6  ;;  %s426_s18 = sshll.u32 %s509_s14, 4  ;;  %s427_s18 = int_to_ptr.vmem [resolvable:$false] %s426_s18 }
  0x3e   : > { %s428_s21 = scalar_lea.vmem %s427_s18, 256  ;;  %p429_p5 = scmp.lt.s32.totalorder %s637_s24, %s427_s18 }
  0x3f   : > { %p424_p13 = pnand %p422_p12, %p408_p3  ;;  %p430_p10 = scmp.lt.s32.totalorder %s428_s21, %s421_s6 }
  0x41   : > { %p425_p0 = pneg %p424_p13  ;;  %p431_p1 = por %p430_p10, %p429_p5 }
  0x43   : > { %p432_p2 = pnand %p431_p1, %p425_p0 }
  0x45   : > { %435 = shalt.err (!%p432_p2)
}
  0x46   : > { %332 = dma.hbm_to_vmem [thread:$0]  (!%p633_p11), %s631_s19, 128, %s637_s24, %s122_s27  }
  0x47   : > { %p744_p7 = scmp.ne.s32.totalorder %s735_s17, 0 }
  0x48   : > { %p745_p3 = scmp.eq.s32.totalorder (!%p744_p7), %s547_s13, 0 }
  0x49   : > { %141 = sbr.rel (%p744_p7) target bundleno = 426 (0x1aa), region = 28 }
  0x50   : > { %481 = dma.done.wait (%p745_p3), [#allocation3], 32   ;;  %p746_p4 = pmov %p745_p3 }
  0x51   : > { %s671_s22 = sand.u32 1, %s498_s10   ;;  %p747_p6 = scmp.ne.s32.totalorder %s733_s15, 0 }
  0x52   : > { %483 = vsyncadd (%p746_p4), [#allocation3], 4294967264  ;;  %s309_s25 = sshll.u32 %s671_s22, 3  ;;  %s148_s23 = scalar_lea.sflag [#allocation6], %s671_s22 }
  0x53   : > { %s151_s26 = scalar_lea.vmem [#allocation5], %s309_s25 }
  0x54   : > { %485 = dma.done.wait (%p747_p6), %s148_s23, 128  }
  0x55   : > { %487 = vsyncadd (%p747_p6), %s148_s23, 4294967168  ;;  %v172_v0 = vld [vmem:[%s151_s26] sm:$0xff]  ;;  %v311_v14 = vld [vmem:[#allocation2] ss:$0 sm:$0xff]  ;;  %s314_s15 = sshll.u32 %s547_s13, 7  ;;  %s171_s17 = scalar_lea.vmem [#allocation7], %s309_s25 }
  0x56   : > { %173 = vadd.xlane.f32.xlu0 %v172_v0  ;;  %v312_v16 = vld [vmem:[#allocation2 + $0x1] ss:$0 sm:$0xff]  ;;  %s219_s19 = sshll.u32 %s171_s17, 4  ;;  %s683_s28 = scalar_lea.hbm %s729_s2, %s314_s15  ;;  %s685_s19 = int_to_ptr.vmem [resolvable:$true] %s219_s19 }
  0x57   : > { %s206_s29 = scalar_lea.sflag [#allocation4], %s671_s22  ;;  %s436_s30 = scalar_lea.vmem %s685_s19, 128 }
  0x58   : > { %p437_p11 = scmp.ne.s32.totalorder %s685_s19, %s436_s30  ;;  %s510_s13 = smov [#allocation7]  }
  0x59   : > { %s440_s3 = sshll.u32 %s510_s13, 4  ;;  %s441_s3 = int_to_ptr.vmem [resolvable:$false] %s440_s3 }
  0x5a   : > { %p438_p9 = pnand %p437_p11, %p618_p8  ;;  %s442_s4 = scalar_lea.vmem %s441_s3, 256 }
  0x5b   : > { %p443_p13 = scmp.lt.s32.totalorder %s685_s19, %s441_s3  ;;  %p444_p0 = scmp.lt.s32.totalorder %s442_s4, %s436_s30 }
  0x5c   : > { %p439_p12 = pneg %p438_p9 }
  0x5d   : > { %p445_p5 = por %p444_p0, %p443_p13 }
  0x5f   : > { %p446_p10 = pnand %p445_p5, %p439_p12 }
  0xe3   : > { %v174_v1 = vpop.xlane.xlu0 %173 }
  0xe4   : > { %v175_v2 = vmul.f32 0.0078125, %v174_v1 }
  0xe6   : > { %v176_v3 = vsub.f32 %v172_v0, %v175_v2 }
  0xe8   : > { %v177_v4 = vmul.f32 %v176_v3, %v176_v3 }
  0xea   : > { %178 = vadd.xlane.f32.xlu0 %v177_v4 }
 0x177   : > { %v179_v5 = vpop.xlane.xlu0 %178 }
 0x178   : > { %v180_v6 = vmul.f32 0.007874016, %v179_v5 }
 0x17a   : > { %374 = vrsqrt.f32 %v180_v6  ;;  %vm183_vm0 = vcmp.eq.f32.partialorder %v180_v6, inf  ;;  %v186_v9 = vand.u32 2147483648, %v180_v6  ;;  %vm185_vm1 = vcmp.eq.f32.partialorder %v180_v6, 0.0 }
 0x184   : > { %v375_v7 = vpop.eup %374 }
 0x185   : > { %v182_v8 = vmul.f32 %v375_v7, %v180_v6 }
 0x187   : > { %v184_v10 = vsel %vm183_vm0, %v180_v6, %v182_v8 }
 0x188   : > { %v187_v11 = vsel %vm185_vm1, %v186_v9, %v184_v10 }
 0x189   : > { %v188_v12 = vadd.f32 1e-06, %v187_v11 }
 0x18b   : > { %376 = vrcp.f32 %v188_v12 }
 0x195   : > { %v377_v13 = vpop.eup %376 }
 0x196   : > { %v193_v15 = vmul.f32 %v377_v13, %v176_v3 }
 0x198   : > { %v198_v17 = vmul.f32 %v311_v14, %v193_v15 }
 0x19a   : > { %v203_v18 = vadd.f32 %v312_v16, %v198_v17 }
 0x19c   : > { %204 = vst [vmem:[%s171_s17] sm:$0xff] %v203_v18 }
 0x19d   : > { %449 = shalt.err (!%p446_p10)
}
 0x19e   : > { %s450_s5 = scalar_lea.hbm %s683_s28, 128  ;;  %s454_s18 = scalar_lea.hbm %s729_s2, 256 }
 0x19f   : > { %p451_p1 = scmp.ne.s32.totalorder %s683_s28, %s450_s5  ;;  %p455_p3 = scmp.lt.u32.totalorder %s683_s28, %s729_s2 }
 0x1a0   : > { %p456_p4 = scmp.lt.u32.totalorder %s454_s18, %s450_s5  ;;  %p458_p11 = scmp.lt.u32.totalorder %s450_s5, %s683_s28 }
 0x1a1   : > { %p452_p2 = pnand %p451_p1, %p618_p8 }
 0x1a2   : > { %p457_p6 = por %p456_p4, %p455_p3 }
 0x1a3   : > { %p453_p7 = pneg %p452_p2 }
 0x1a4   : > { %p459_p9 = por %p458_p11, %p457_p6 }
 0x1a6   : > { %p460_p12 = pnand %p459_p9, %p453_p7 }
 0x1a8   : > { %463 = shalt.err (!%p460_p12)
}
 0x1a9   : > { %323 = dma.vmem_to_hbm [thread:$0]  (%p618_p8), %s685_s19, 128, %s683_s28, %s206_s29  }
 0x1aa PF: > { %s231_s25 = sand.u32 1, %s494_s9   ;;  %p748_p13 = scmp.ne.s32.totalorder %s734_s16, 0 }
 0x1ab   : > { %p749_p0 = scmp.ge.s32.totalorder %s506_s12, 2  ;;  %s232_s23 = scalar_lea.sflag [#allocation4], %s231_s25 }
 0x1ad   : > { %p334_p5 = pnand %p749_p0, %p748_p13 }
 0x1af   : > { %489 = dma.done.wait (!%p334_p5), %s232_s23, 128  }
 0x1b0   : > { %491 = vsyncadd (!%p334_p5), %s232_s23, 4294967168  ;;  %p16_p10 = scmp.ge.s32.totalorder %s574_s20, 4   ;;  %s750_s9 = smov %s498_s10 }
 0x1b1   : > { %s751_s10 = smov %s502_s11  ;;  %s752_s11 = smov %s610_s7 }
 0x1b2   : > { %s753_s12 = smov %s574_s20  ;;  %18 = sbr.rel (!%p16_p10) target bundleno = 6 (0x6), region = 78 }
 0x1b9   :  { %237 = vsyncpa [#allocation3], 1 }
 0x1ba   :  { %239 = vsyncpa [#allocation3 + $0x1], 1 }
 0x1bb   :  { %240 = vsyncpa [#allocation6], 1 }
 0x1bc   :  { %242 = vsyncpa [#allocation6 + $0x1], 1 }
 0x1bd   :  { %243 = vsyncpa [#allocation4], 1 }
 0x1be   :  { %245 = vsyncpa [#allocation4 + $0x1], 1 }

</bundles_post_ra>
